<compile_context>
chip_gen: v6e
topology: v6e:2x2x1
jax: 0.10.0
libtpu: 0.0.40
codegen_flags: <defaults>
</compile_context>

<pallas_src>
import jax
import jax.numpy as jnp
from jax.experimental import pallas as pl
from jax.experimental.pallas import tpu as pltpu

CIN = 3
COUT = 8


def _fused_kernel(x1_ref, x2_ref, w_ref, b_ref, o_ref):
    """One grid step == one batch tile.

    x1_ref: (Bt, CIN,  Hp, Wp)  VMEM  zero-padded conv input
    x2_ref: (Bt, COUT, Hp, Wp)  VMEM
    w_ref : (COUT, CIN)         SMEM  1x1 conv weights (scalars)
    b_ref : (COUT,)             SMEM  bias + 3 (folded on host)
    o_ref : (Bt, COUT, Hp, Wp)  VMEM
    """
    # Load the three input-channel planes once; reused for every output chan.
    x1 = [x1_ref[:, c] for c in range(CIN)]              # each (Bt, Hp, Wp)
    for o in range(COUT):
        acc = x2_ref[:, o] + b_ref[o]                    # (Bt, Hp, Wp)
        for c in range(CIN):
            acc = acc + w_ref[o, c] * x1[c]              # scalar-broadcast FMA
        o_ref[:, o] = (jnp.clip(acc, 0.0, 6.0) * (1.0 / 6.0)).astype(o_ref.dtype)


def _pick_batch_tile(N, Hp, Wp):
    """Batch-tile size: ~2 MiB of fresh data per grid step, >= 2 steps if N>=2."""
    per_image = (CIN + 2 * COUT) * Hp * Wp * 4           # x1p + x2 + out, f32 bytes
    bt = max(1, (2 * 1024 * 1024) // per_image)          # ~2 MiB/step; x2 buffering ~4 MiB
    if N >= 2:
        bt = min(bt, N // 2)                              # keep >= 2 grid steps (v7x 2 TCs)
    bt = max(1, min(bt, N))
    while N % bt:                                         # keep the grid exact
        bt -= 1
    return bt


def fused_conv1x1_hardsig(x1, x2, weight, bias, *, batch_tile=None):
    """x1: (N, 3, H, W) f32; x2: (N, 8, H+2, W+2) f32.
    weight: (8, 3, 1, 1); bias: (8,).
    Returns (N, 8, H+2, W+2) f32, matching the PyTorch module."""
    N, C, H, W = x1.shape
    assert C == CIN
    Hp, Wp = H + 2, W + 2
    assert x2.shape == (N, COUT, Hp, Wp)

    # padding=1 for a 1x1 kernel == zero-pad x1 spatially.  x1 is the tiny
    # 3-channel tensor; this is the only glue op left outside the pallas_call
    # (x2 and the output keep their native 4-D layout -> no relayout copies).
    x1p = jnp.pad(x1, ((0, 0), (0, 0), (1, 1), (1, 1)))

    w2d = weight.reshape(COUT, CIN).astype(jnp.float32)   # (COUT, CIN) scalars
    b1d = bias.astype(jnp.float32) + 3.0                  # fold the "+3"

    bt = batch_tile or _pick_batch_tile(N, Hp, Wp)
    grid = (N // bt,)

    out = pl.pallas_call(
        _fused_kernel,
        out_shape=jax.ShapeDtypeStruct((N, COUT, Hp, Wp), jnp.float32),
        grid_spec=pltpu.PrefetchScalarGridSpec(
            num_scalar_prefetch=0,
            grid=grid,
            in_specs=[
                # last-two block dims equal the full array dims -> (8,128) rule OK
                pl.BlockSpec((bt, CIN, Hp, Wp), lambda n: (n, 0, 0, 0)),    # x1 (padded)
                pl.BlockSpec((bt, COUT, Hp, Wp), lambda n: (n, 0, 0, 0)),   # x2
                pl.BlockSpec(memory_space=pltpu.MemorySpace.SMEM),          # weights
                pl.BlockSpec(memory_space=pltpu.MemorySpace.SMEM),          # bias + 3
            ],
            out_specs=pl.BlockSpec((bt, COUT, Hp, Wp), lambda n: (n, 0, 0, 0)),
        ),
        compiler_params=pltpu.CompilerParams(
            dimension_semantics=("parallel",)),
    )(x1p, x2, w2d, b1d)

    return out


def _reference(x1, x2, weight, bias):
    # Pure-JAX reference mirroring the PyTorch module semantics.
    x1p = jnp.pad(x1, ((0, 0), (0, 0), (1, 1), (1, 1)))
    w2d = weight.reshape(COUT, CIN)
    t1 = jnp.einsum("nchw,oc->nohw", x1p, w2d) + bias[None, :, None, None]
    t2 = x2 + 3.0
    t3 = jnp.clip(t1 + t2, 0.0, 6.0)
    return t3 / 6.0


if __name__ == "__main__":
    key = jax.random.PRNGKey(0)
    k1, k2, kw, kb = jax.random.split(key, 4)

    # small shapes consistent with the module (batch=2, spatial=16)
    N, H, W = 2, 16, 16
    x1 = jax.random.normal(k1, (N, CIN, H, W), dtype=jnp.float32)
    x2 = jax.random.normal(k2, (N, COUT, H + 2, W + 2), dtype=jnp.float32)

    # deterministic Conv2d(3, 8, 1) parameters
    weight = jax.random.normal(kw, (COUT, CIN, 1, 1), dtype=jnp.float32) * 0.1
    bias = jax.random.normal(kb, (COUT,), dtype=jnp.float32) * 0.1

    out = jax.block_until_ready(fused_conv1x1_hardsig(x1, x2, weight, bias))

    ref = _reference(x1, x2, weight, bias)
    assert out.shape == (N, COUT, H + 2, W + 2)
    assert jnp.allclose(out, ref, atol=1e-5, rtol=1e-5)
    print("KERNEL_OK")
</pallas_src>

<mosaic_0001>
module attributes {stable_mosaic.version = 11 : i64} {
  func.func @_fused_kernel(%arg0: i32, %arg1: memref<1x3x18x18xf32, #tpu.memory_space<vmem>>, %arg2: memref<1x8x18x18xf32, #tpu.memory_space<vmem>>, %arg3: memref<8x3xf32, #tpu.memory_space<smem>>, %arg4: memref<8xf32, #tpu.memory_space<smem>>, %arg5: memref<1x8x18x18xf32, #tpu.memory_space<vmem>>) attributes {dimension_semantics = [#tpu.dimension_semantics<parallel>], iteration_bounds = array<i64: 2>, scalar_prefetch = 0 : i64, scratch_operands = 0 : i64, tpu.core_type = #tpu.core_type<tc>, window_params = [{transform_indices = @transform_0, window_bounds = array<i64: 1, 3, 18, 18>}, {transform_indices = @transform_1, window_bounds = array<i64: 1, 8, 18, 18>}, {transform_indices = @transform_2, window_bounds = array<i64: 8, 3>}, {transform_indices = @transform_3, window_bounds = array<i64: 8>}, {transform_indices = @transform_4, window_bounds = array<i64: 1, 8, 18, 18>}]} {
    %c0 = arith.constant 0 : index
    %c0_0 = arith.constant 0 : index
    %c0_1 = arith.constant 0 : index
    %c0_2 = arith.constant 0 : index
    %0 = vector.load %arg1[%c0, %c0_0, %c0_1, %c0_2] : memref<1x3x18x18xf32, #tpu.memory_space<vmem>>, vector<1x1x18x18xf32>
    %1 = vector.shape_cast %0 : vector<1x1x18x18xf32> to vector<1x18x18xf32>
    %c0_3 = arith.constant 0 : index
    %c1 = arith.constant 1 : index
    %c0_4 = arith.constant 0 : index
    %c0_5 = arith.constant 0 : index
    %2 = vector.load %arg1[%c0_3, %c1, %c0_4, %c0_5] : memref<1x3x18x18xf32, #tpu.memory_space<vmem>>, vector<1x1x18x18xf32>
    %3 = vector.shape_cast %2 : vector<1x1x18x18xf32> to vector<1x18x18xf32>
    %c0_6 = arith.constant 0 : index
    %c2 = arith.constant 2 : index
    %c0_7 = arith.constant 0 : index
    %c0_8 = arith.constant 0 : index
    %4 = vector.load %arg1[%c0_6, %c2, %c0_7, %c0_8] : memref<1x3x18x18xf32, #tpu.memory_space<vmem>>, vector<1x1x18x18xf32>
    %5 = vector.shape_cast %4 : vector<1x1x18x18xf32> to vector<1x18x18xf32>
    %c0_9 = arith.constant 0 : index
    %c0_10 = arith.constant 0 : index
    %c0_11 = arith.constant 0 : index
    %c0_12 = arith.constant 0 : index
    %6 = vector.load %arg2[%c0_9, %c0_10, %c0_11, %c0_12] : memref<1x8x18x18xf32, #tpu.memory_space<vmem>>, vector<1x1x18x18xf32>
    %7 = vector.shape_cast %6 : vector<1x1x18x18xf32> to vector<1x18x18xf32>
    %c0_13 = arith.constant 0 : index
    %8 = memref.load %arg4[%c0_13] : memref<8xf32, #tpu.memory_space<smem>>
    %9 = vector.broadcast %8 : f32 to vector<1x18x18xf32>
    %10 = arith.addf %7, %9 : vector<1x18x18xf32>
    %c0_14 = arith.constant 0 : index
    %c0_15 = arith.constant 0 : index
    %11 = memref.load %arg3[%c0_14, %c0_15] : memref<8x3xf32, #tpu.memory_space<smem>>
    %12 = vector.broadcast %11 : f32 to vector<1x18x18xf32>
    %13 = arith.mulf %12, %1 : vector<1x18x18xf32>
    %14 = arith.addf %10, %13 : vector<1x18x18xf32>
    %c0_16 = arith.constant 0 : index
    %c1_17 = arith.constant 1 : index
    %15 = memref.load %arg3[%c0_16, %c1_17] : memref<8x3xf32, #tpu.memory_space<smem>>
    %16 = vector.broadcast %15 : f32 to vector<1x18x18xf32>
    %17 = arith.mulf %16, %3 : vector<1x18x18xf32>
    %18 = arith.addf %14, %17 : vector<1x18x18xf32>
    %c0_18 = arith.constant 0 : index
    %c2_19 = arith.constant 2 : index
    %19 = memref.load %arg3[%c0_18, %c2_19] : memref<8x3xf32, #tpu.memory_space<smem>>
    %20 = vector.broadcast %19 : f32 to vector<1x18x18xf32>
    %21 = arith.mulf %20, %5 : vector<1x18x18xf32>
    %22 = arith.addf %18, %21 : vector<1x18x18xf32>
    %cst = arith.constant 0.000000e+00 : f32
    %cst_20 = arith.constant 6.000000e+00 : f32
    %23 = vector.broadcast %cst : f32 to vector<1x18x18xf32>
    %24 = arith.maximumf %23, %22 : vector<1x18x18xf32>
    %25 = vector.broadcast %cst_20 : f32 to vector<1x18x18xf32>
    %26 = arith.minimumf %25, %24 : vector<1x18x18xf32>
    %cst_21 = arith.constant 0.166666672 : f32
    %27 = vector.broadcast %cst_21 : f32 to vector<1x18x18xf32>
    %28 = arith.mulf %26, %27 : vector<1x18x18xf32>
    %c0_22 = arith.constant 0 : index
    %c0_23 = arith.constant 0 : index
    %c0_24 = arith.constant 0 : index
    %c0_25 = arith.constant 0 : index
    %29 = vector.load %arg5[%c0_22, %c0_23, %c0_24, %c0_25] : memref<1x8x18x18xf32, #tpu.memory_space<vmem>>, vector<1x1x18x18xf32>
    %30 = vector.shape_cast %29 : vector<1x1x18x18xf32> to vector<1x18x18xf32>
    %31 = vector.shape_cast %28 : vector<1x18x18xf32> to vector<1x1x18x18xf32>
    tpu.vector_store %arg5[%c0_22, %c0_23, %c0_24, %c0_25], %31 {strides = array<i32>} : memref<1x8x18x18xf32, #tpu.memory_space<vmem>>, vector<1x1x18x18xf32>,
    %c0_26 = arith.constant 0 : index
    %c1_27 = arith.constant 1 : index
    %c0_28 = arith.constant 0 : index
    %c0_29 = arith.constant 0 : index
    %32 = vector.load %arg2[%c0_26, %c1_27, %c0_28, %c0_29] : memref<1x8x18x18xf32, #tpu.memory_space<vmem>>, vector<1x1x18x18xf32>
    %33 = vector.shape_cast %32 : vector<1x1x18x18xf32> to vector<1x18x18xf32>
    %c1_30 = arith.constant 1 : index
    %34 = memref.load %arg4[%c1_30] : memref<8xf32, #tpu.memory_space<smem>>
    %35 = vector.broadcast %34 : f32 to vector<1x18x18xf32>
    %36 = arith.addf %33, %35 : vector<1x18x18xf32>
    %c1_31 = arith.constant 1 : index
    %c0_32 = arith.constant 0 : index
    %37 = memref.load %arg3[%c1_31, %c0_32] : memref<8x3xf32, #tpu.memory_space<smem>>
    %38 = vector.broadcast %37 : f32 to vector<1x18x18xf32>
    %39 = arith.mulf %38, %1 : vector<1x18x18xf32>
    %40 = arith.addf %36, %39 : vector<1x18x18xf32>
    %c1_33 = arith.constant 1 : index
    %c1_34 = arith.constant 1 : index
    %41 = memref.load %arg3[%c1_33, %c1_34] : memref<8x3xf32, #tpu.memory_space<smem>>
    %42 = vector.broadcast %41 : f32 to vector<1x18x18xf32>
    %43 = arith.mulf %42, %3 : vector<1x18x18xf32>
    %44 = arith.addf %40, %43 : vector<1x18x18xf32>
    %c1_35 = arith.constant 1 : index
    %c2_36 = arith.constant 2 : index
    %45 = memref.load %arg3[%c1_35, %c2_36] : memref<8x3xf32, #tpu.memory_space<smem>>
    %46 = vector.broadcast %45 : f32 to vector<1x18x18xf32>
    %47 = arith.mulf %46, %5 : vector<1x18x18xf32>
    %48 = arith.addf %44, %47 : vector<1x18x18xf32>
    %cst_37 = arith.constant 0.000000e+00 : f32
    %cst_38 = arith.constant 6.000000e+00 : f32
    %49 = vector.broadcast %cst_37 : f32 to vector<1x18x18xf32>
    %50 = arith.maximumf %49, %48 : vector<1x18x18xf32>
    %51 = vector.broadcast %cst_38 : f32 to vector<1x18x18xf32>
    %52 = arith.minimumf %51, %50 : vector<1x18x18xf32>
    %cst_39 = arith.constant 0.166666672 : f32
    %53 = vector.broadcast %cst_39 : f32 to vector<1x18x18xf32>
    %54 = arith.mulf %52, %53 : vector<1x18x18xf32>
    %c0_40 = arith.constant 0 : index
    %c1_41 = arith.constant 1 : index
    %c0_42 = arith.constant 0 : index
    %c0_43 = arith.constant 0 : index
    %55 = vector.load %arg5[%c0_40, %c1_41, %c0_42, %c0_43] : memref<1x8x18x18xf32, #tpu.memory_space<vmem>>, vector<1x1x18x18xf32>
    %56 = vector.shape_cast %55 : vector<1x1x18x18xf32> to vector<1x18x18xf32>
    %57 = vector.shape_cast %54 : vector<1x18x18xf32> to vector<1x1x18x18xf32>
    tpu.vector_store %arg5[%c0_40, %c1_41, %c0_42, %c0_43], %57 {strides = array<i32>} : memref<1x8x18x18xf32, #tpu.memory_space<vmem>>, vector<1x1x18x18xf32>,
    %c0_44 = arith.constant 0 : index
    %c2_45 = arith.constant 2 : index
    %c0_46 = arith.constant 0 : index
    %c0_47 = arith.constant 0 : index
    %58 = vector.load %arg2[%c0_44, %c2_45, %c0_46, %c0_47] : memref<1x8x18x18xf32, #tpu.memory_space<vmem>>, vector<1x1x18x18xf32>
    %59 = vector.shape_cast %58 : vector<1x1x18x18xf32> to vector<1x18x18xf32>
    %c2_48 = arith.constant 2 : index
    %60 = memref.load %arg4[%c2_48] : memref<8xf32, #tpu.memory_space<smem>>
    %61 = vector.broadcast %60 : f32 to vector<1x18x18xf32>
    %62 = arith.addf %59, %61 : vector<1x18x18xf32>
    %c2_49 = arith.constant 2 : index
    %c0_50 = arith.constant 0 : index
    %63 = memref.load %arg3[%c2_49, %c0_50] : memref<8x3xf32, #tpu.memory_space<smem>>
    %64 = vector.broadcast %63 : f32 to vector<1x18x18xf32>
    %65 = arith.mulf %64, %1 : vector<1x18x18xf32>
    %66 = arith.addf %62, %65 : vector<1x18x18xf32>
    %c2_51 = arith.constant 2 : index
    %c1_52 = arith.constant 1 : index
    %67 = memref.load %arg3[%c2_51, %c1_52] : memref<8x3xf32, #tpu.memory_space<smem>>
    %68 = vector.broadcast %67 : f32 to vector<1x18x18xf32>
    %69 = arith.mulf %68, %3 : vector<1x18x18xf32>
    %70 = arith.addf %66, %69 : vector<1x18x18xf32>
    %c2_53 = arith.constant 2 : index
    %c2_54 = arith.constant 2 : index
    %71 = memref.load %arg3[%c2_53, %c2_54] : memref<8x3xf32, #tpu.memory_space<smem>>
    %72 = vector.broadcast %71 : f32 to vector<1x18x18xf32>
    %73 = arith.mulf %72, %5 : vector<1x18x18xf32>
    %74 = arith.addf %70, %73 : vector<1x18x18xf32>
    %cst_55 = arith.constant 0.000000e+00 : f32
    %cst_56 = arith.constant 6.000000e+00 : f32
    %75 = vector.broadcast %cst_55 : f32 to vector<1x18x18xf32>
    %76 = arith.maximumf %75, %74 : vector<1x18x18xf32>
    %77 = vector.broadcast %cst_56 : f32 to vector<1x18x18xf32>
    %78 = arith.minimumf %77, %76 : vector<1x18x18xf32>
    %cst_57 = arith.constant 0.166666672 : f32
    %79 = vector.broadcast %cst_57 : f32 to vector<1x18x18xf32>
    %80 = arith.mulf %78, %79 : vector<1x18x18xf32>
    %c0_58 = arith.constant 0 : index
    %c2_59 = arith.constant 2 : index
    %c0_60 = arith.constant 0 : index
    %c0_61 = arith.constant 0 : index
    %81 = vector.load %arg5[%c0_58, %c2_59, %c0_60, %c0_61] : memref<1x8x18x18xf32, #tpu.memory_space<vmem>>, vector<1x1x18x18xf32>
    %82 = vector.shape_cast %81 : vector<1x1x18x18xf32> to vector<1x18x18xf32>
    %83 = vector.shape_cast %80 : vector<1x18x18xf32> to vector<1x1x18x18xf32>
    tpu.vector_store %arg5[%c0_58, %c2_59, %c0_60, %c0_61], %83 {strides = array<i32>} : memref<1x8x18x18xf32, #tpu.memory_space<vmem>>, vector<1x1x18x18xf32>,
    %c0_62 = arith.constant 0 : index
    %c3 = arith.constant 3 : index
    %c0_63 = arith.constant 0 : index
    %c0_64 = arith.constant 0 : index
    %84 = vector.load %arg2[%c0_62, %c3, %c0_63, %c0_64] : memref<1x8x18x18xf32, #tpu.memory_space<vmem>>, vector<1x1x18x18xf32>
    %85 = vector.shape_cast %84 : vector<1x1x18x18xf32> to vector<1x18x18xf32>
    %c3_65 = arith.constant 3 : index
    %86 = memref.load %arg4[%c3_65] : memref<8xf32, #tpu.memory_space<smem>>
    %87 = vector.broadcast %86 : f32 to vector<1x18x18xf32>
    %88 = arith.addf %85, %87 : vector<1x18x18xf32>
    %c3_66 = arith.constant 3 : index
    %c0_67 = arith.constant 0 : index
    %89 = memref.load %arg3[%c3_66, %c0_67] : memref<8x3xf32, #tpu.memory_space<smem>>
    %90 = vector.broadcast %89 : f32 to vector<1x18x18xf32>
    %91 = arith.mulf %90, %1 : vector<1x18x18xf32>
    %92 = arith.addf %88, %91 : vector<1x18x18xf32>
    %c3_68 = arith.constant 3 : index
    %c1_69 = arith.constant 1 : index
    %93 = memref.load %arg3[%c3_68, %c1_69] : memref<8x3xf32, #tpu.memory_space<smem>>
    %94 = vector.broadcast %93 : f32 to vector<1x18x18xf32>
    %95 = arith.mulf %94, %3 : vector<1x18x18xf32>
    %96 = arith.addf %92, %95 : vector<1x18x18xf32>
    %c3_70 = arith.constant 3 : index
    %c2_71 = arith.constant 2 : index
    %97 = memref.load %arg3[%c3_70, %c2_71] : memref<8x3xf32, #tpu.memory_space<smem>>
    %98 = vector.broadcast %97 : f32 to vector<1x18x18xf32>
    %99 = arith.mulf %98, %5 : vector<1x18x18xf32>
    %100 = arith.addf %96, %99 : vector<1x18x18xf32>
    %cst_72 = arith.constant 0.000000e+00 : f32
    %cst_73 = arith.constant 6.000000e+00 : f32
    %101 = vector.broadcast %cst_72 : f32 to vector<1x18x18xf32>
    %102 = arith.maximumf %101, %100 : vector<1x18x18xf32>
    %103 = vector.broadcast %cst_73 : f32 to vector<1x18x18xf32>
    %104 = arith.minimumf %103, %102 : vector<1x18x18xf32>
    %cst_74 = arith.constant 0.166666672 : f32
    %105 = vector.broadcast %cst_74 : f32 to vector<1x18x18xf32>
    %106 = arith.mulf %104, %105 : vector<1x18x18xf32>
    %c0_75 = arith.constant 0 : index
    %c3_76 = arith.constant 3 : index
    %c0_77 = arith.constant 0 : index
    %c0_78 = arith.constant 0 : index
    %107 = vector.load %arg5[%c0_75, %c3_76, %c0_77, %c0_78] : memref<1x8x18x18xf32, #tpu.memory_space<vmem>>, vector<1x1x18x18xf32>
    %108 = vector.shape_cast %107 : vector<1x1x18x18xf32> to vector<1x18x18xf32>
    %109 = vector.shape_cast %106 : vector<1x18x18xf32> to vector<1x1x18x18xf32>
    tpu.vector_store %arg5[%c0_75, %c3_76, %c0_77, %c0_78], %109 {strides = array<i32>} : memref<1x8x18x18xf32, #tpu.memory_space<vmem>>, vector<1x1x18x18xf32>,
    %c0_79 = arith.constant 0 : index
    %c4 = arith.constant 4 : index
    %c0_80 = arith.constant 0 : index
    %c0_81 = arith.constant 0 : index
    %110 = vector.load %arg2[%c0_79, %c4, %c0_80, %c0_81] : memref<1x8x18x18xf32, #tpu.memory_space<vmem>>, vector<1x1x18x18xf32>
    %111 = vector.shape_cast %110 : vector<1x1x18x18xf32> to vector<1x18x18xf32>
    %c4_82 = arith.constant 4 : index
    %112 = memref.load %arg4[%c4_82] : memref<8xf32, #tpu.memory_space<smem>>
    %113 = vector.broadcast %112 : f32 to vector<1x18x18xf32>
    %114 = arith.addf %111, %113 : vector<1x18x18xf32>
    %c4_83 = arith.constant 4 : index
    %c0_84 = arith.constant 0 : index
    %115 = memref.load %arg3[%c4_83, %c0_84] : memref<8x3xf32, #tpu.memory_space<smem>>
    %116 = vector.broadcast %115 : f32 to vector<1x18x18xf32>
    %117 = arith.mulf %116, %1 : vector<1x18x18xf32>
    %118 = arith.addf %114, %117 : vector<1x18x18xf32>
    %c4_85 = arith.constant 4 : index
    %c1_86 = arith.constant 1 : index
    %119 = memref.load %arg3[%c4_85, %c1_86] : memref<8x3xf32, #tpu.memory_space<smem>>
    %120 = vector.broadcast %119 : f32 to vector<1x18x18xf32>
    %121 = arith.mulf %120, %3 : vector<1x18x18xf32>
    %122 = arith.addf %118, %121 : vector<1x18x18xf32>
    %c4_87 = arith.constant 4 : index
    %c2_88 = arith.constant 2 : index
    %123 = memref.load %arg3[%c4_87, %c2_88] : memref<8x3xf32, #tpu.memory_space<smem>>
    %124 = vector.broadcast %123 : f32 to vector<1x18x18xf32>
    %125 = arith.mulf %124, %5 : vector<1x18x18xf32>
    %126 = arith.addf %122, %125 : vector<1x18x18xf32>
    %cst_89 = arith.constant 0.000000e+00 : f32
    %cst_90 = arith.constant 6.000000e+00 : f32
    %127 = vector.broadcast %cst_89 : f32 to vector<1x18x18xf32>
    %128 = arith.maximumf %127, %126 : vector<1x18x18xf32>
    %129 = vector.broadcast %cst_90 : f32 to vector<1x18x18xf32>
    %130 = arith.minimumf %129, %128 : vector<1x18x18xf32>
    %cst_91 = arith.constant 0.166666672 : f32
    %131 = vector.broadcast %cst_91 : f32 to vector<1x18x18xf32>
    %132 = arith.mulf %130, %131 : vector<1x18x18xf32>
    %c0_92 = arith.constant 0 : index
    %c4_93 = arith.constant 4 : index
    %c0_94 = arith.constant 0 : index
    %c0_95 = arith.constant 0 : index
    %133 = vector.load %arg5[%c0_92, %c4_93, %c0_94, %c0_95] : memref<1x8x18x18xf32, #tpu.memory_space<vmem>>, vector<1x1x18x18xf32>
    %134 = vector.shape_cast %133 : vector<1x1x18x18xf32> to vector<1x18x18xf32>
    %135 = vector.shape_cast %132 : vector<1x18x18xf32> to vector<1x1x18x18xf32>
    tpu.vector_store %arg5[%c0_92, %c4_93, %c0_94, %c0_95], %135 {strides = array<i32>} : memref<1x8x18x18xf32, #tpu.memory_space<vmem>>, vector<1x1x18x18xf32>,
    %c0_96 = arith.constant 0 : index
    %c5 = arith.constant 5 : index
    %c0_97 = arith.constant 0 : index
    %c0_98 = arith.constant 0 : index
    %136 = vector.load %arg2[%c0_96, %c5, %c0_97, %c0_98] : memref<1x8x18x18xf32, #tpu.memory_space<vmem>>, vector<1x1x18x18xf32>
    %137 = vector.shape_cast %136 : vector<1x1x18x18xf32> to vector<1x18x18xf32>
    %c5_99 = arith.constant 5 : index
    %138 = memref.load %arg4[%c5_99] : memref<8xf32, #tpu.memory_space<smem>>
    %139 = vector.broadcast %138 : f32 to vector<1x18x18xf32>
    %140 = arith.addf %137, %139 : vector<1x18x18xf32>
    %c5_100 = arith.constant 5 : index
    %c0_101 = arith.constant 0 : index
    %141 = memref.load %arg3[%c5_100, %c0_101] : memref<8x3xf32, #tpu.memory_space<smem>>
    %142 = vector.broadcast %141 : f32 to vector<1x18x18xf32>
    %143 = arith.mulf %142, %1 : vector<1x18x18xf32>
    %144 = arith.addf %140, %143 : vector<1x18x18xf32>
    %c5_102 = arith.constant 5 : index
    %c1_103 = arith.constant 1 : index
    %145 = memref.load %arg3[%c5_102, %c1_103] : memref<8x3xf32, #tpu.memory_space<smem>>
    %146 = vector.broadcast %145 : f32 to vector<1x18x18xf32>
    %147 = arith.mulf %146, %3 : vector<1x18x18xf32>
    %148 = arith.addf %144, %147 : vector<1x18x18xf32>
    %c5_104 = arith.constant 5 : index
    %c2_105 = arith.constant 2 : index
    %149 = memref.load %arg3[%c5_104, %c2_105] : memref<8x3xf32, #tpu.memory_space<smem>>
    %150 = vector.broadcast %149 : f32 to vector<1x18x18xf32>
    %151 = arith.mulf %150, %5 : vector<1x18x18xf32>
    %152 = arith.addf %148, %151 : vector<1x18x18xf32>
    %cst_106 = arith.constant 0.000000e+00 : f32
    %cst_107 = arith.constant 6.000000e+00 : f32
    %153 = vector.broadcast %cst_106 : f32 to vector<1x18x18xf32>
    %154 = arith.maximumf %153, %152 : vector<1x18x18xf32>
    %155 = vector.broadcast %cst_107 : f32 to vector<1x18x18xf32>
    %156 = arith.minimumf %155, %154 : vector<1x18x18xf32>
    %cst_108 = arith.constant 0.166666672 : f32
    %157 = vector.broadcast %cst_108 : f32 to vector<1x18x18xf32>
    %158 = arith.mulf %156, %157 : vector<1x18x18xf32>
    %c0_109 = arith.constant 0 : index
    %c5_110 = arith.constant 5 : index
    %c0_111 = arith.constant 0 : index
    %c0_112 = arith.constant 0 : index
    %159 = vector.load %arg5[%c0_109, %c5_110, %c0_111, %c0_112] : memref<1x8x18x18xf32, #tpu.memory_space<vmem>>, vector<1x1x18x18xf32>
    %160 = vector.shape_cast %159 : vector<1x1x18x18xf32> to vector<1x18x18xf32>
    %161 = vector.shape_cast %158 : vector<1x18x18xf32> to vector<1x1x18x18xf32>
    tpu.vector_store %arg5[%c0_109, %c5_110, %c0_111, %c0_112], %161 {strides = array<i32>} : memref<1x8x18x18xf32, #tpu.memory_space<vmem>>, vector<1x1x18x18xf32>,
    %c0_113 = arith.constant 0 : index
    %c6 = arith.constant 6 : index
    %c0_114 = arith.constant 0 : index
    %c0_115 = arith.constant 0 : index
    %162 = vector.load %arg2[%c0_113, %c6, %c0_114, %c0_115] : memref<1x8x18x18xf32, #tpu.memory_space<vmem>>, vector<1x1x18x18xf32>
    %163 = vector.shape_cast %162 : vector<1x1x18x18xf32> to vector<1x18x18xf32>
    %c6_116 = arith.constant 6 : index
    %164 = memref.load %arg4[%c6_116] : memref<8xf32, #tpu.memory_space<smem>>
    %165 = vector.broadcast %164 : f32 to vector<1x18x18xf32>
    %166 = arith.addf %163, %165 : vector<1x18x18xf32>
    %c6_117 = arith.constant 6 : index
    %c0_118 = arith.constant 0 : index
    %167 = memref.load %arg3[%c6_117, %c0_118] : memref<8x3xf32, #tpu.memory_space<smem>>
    %168 = vector.broadcast %167 : f32 to vector<1x18x18xf32>
    %169 = arith.mulf %168, %1 : vector<1x18x18xf32>
    %170 = arith.addf %166, %169 : vector<1x18x18xf32>
    %c6_119 = arith.constant 6 : index
    %c1_120 = arith.constant 1 : index
    %171 = memref.load %arg3[%c6_119, %c1_120] : memref<8x3xf32, #tpu.memory_space<smem>>
    %172 = vector.broadcast %171 : f32 to vector<1x18x18xf32>
    %173 = arith.mulf %172, %3 : vector<1x18x18xf32>
    %174 = arith.addf %170, %173 : vector<1x18x18xf32>
    %c6_121 = arith.constant 6 : index
    %c2_122 = arith.constant 2 : index
    %175 = memref.load %arg3[%c6_121, %c2_122] : memref<8x3xf32, #tpu.memory_space<smem>>
    %176 = vector.broadcast %175 : f32 to vector<1x18x18xf32>
    %177 = arith.mulf %176, %5 : vector<1x18x18xf32>
    %178 = arith.addf %174, %177 : vector<1x18x18xf32>
    %cst_123 = arith.constant 0.000000e+00 : f32
    %cst_124 = arith.constant 6.000000e+00 : f32
    %179 = vector.broadcast %cst_123 : f32 to vector<1x18x18xf32>
    %180 = arith.maximumf %179, %178 : vector<1x18x18xf32>
    %181 = vector.broadcast %cst_124 : f32 to vector<1x18x18xf32>
    %182 = arith.minimumf %181, %180 : vector<1x18x18xf32>
    %cst_125 = arith.constant 0.166666672 : f32
    %183 = vector.broadcast %cst_125 : f32 to vector<1x18x18xf32>
    %184 = arith.mulf %182, %183 : vector<1x18x18xf32>
    %c0_126 = arith.constant 0 : index
    %c6_127 = arith.constant 6 : index
    %c0_128 = arith.constant 0 : index
    %c0_129 = arith.constant 0 : index
    %185 = vector.load %arg5[%c0_126, %c6_127, %c0_128, %c0_129] : memref<1x8x18x18xf32, #tpu.memory_space<vmem>>, vector<1x1x18x18xf32>
    %186 = vector.shape_cast %185 : vector<1x1x18x18xf32> to vector<1x18x18xf32>
    %187 = vector.shape_cast %184 : vector<1x18x18xf32> to vector<1x1x18x18xf32>
    tpu.vector_store %arg5[%c0_126, %c6_127, %c0_128, %c0_129], %187 {strides = array<i32>} : memref<1x8x18x18xf32, #tpu.memory_space<vmem>>, vector<1x1x18x18xf32>,
    %c0_130 = arith.constant 0 : index
    %c7 = arith.constant 7 : index
    %c0_131 = arith.constant 0 : index
    %c0_132 = arith.constant 0 : index
    %188 = vector.load %arg2[%c0_130, %c7, %c0_131, %c0_132] : memref<1x8x18x18xf32, #tpu.memory_space<vmem>>, vector<1x1x18x18xf32>
    %189 = vector.shape_cast %188 : vector<1x1x18x18xf32> to vector<1x18x18xf32>
    %c7_133 = arith.constant 7 : index
    %190 = memref.load %arg4[%c7_133] : memref<8xf32, #tpu.memory_space<smem>>
    %191 = vector.broadcast %190 : f32 to vector<1x18x18xf32>
    %192 = arith.addf %189, %191 : vector<1x18x18xf32>
    %c7_134 = arith.constant 7 : index
    %c0_135 = arith.constant 0 : index
    %193 = memref.load %arg3[%c7_134, %c0_135] : memref<8x3xf32, #tpu.memory_space<smem>>
    %194 = vector.broadcast %193 : f32 to vector<1x18x18xf32>
    %195 = arith.mulf %194, %1 : vector<1x18x18xf32>
    %196 = arith.addf %192, %195 : vector<1x18x18xf32>
    %c7_136 = arith.constant 7 : index
    %c1_137 = arith.constant 1 : index
    %197 = memref.load %arg3[%c7_136, %c1_137] : memref<8x3xf32, #tpu.memory_space<smem>>
    %198 = vector.broadcast %197 : f32 to vector<1x18x18xf32>
    %199 = arith.mulf %198, %3 : vector<1x18x18xf32>
    %200 = arith.addf %196, %199 : vector<1x18x18xf32>
    %c7_138 = arith.constant 7 : index
    %c2_139 = arith.constant 2 : index
    %201 = memref.load %arg3[%c7_138, %c2_139] : memref<8x3xf32, #tpu.memory_space<smem>>
    %202 = vector.broadcast %201 : f32 to vector<1x18x18xf32>
    %203 = arith.mulf %202, %5 : vector<1x18x18xf32>
    %204 = arith.addf %200, %203 : vector<1x18x18xf32>
    %cst_140 = arith.constant 0.000000e+00 : f32
    %cst_141 = arith.constant 6.000000e+00 : f32
    %205 = vector.broadcast %cst_140 : f32 to vector<1x18x18xf32>
    %206 = arith.maximumf %205, %204 : vector<1x18x18xf32>
    %207 = vector.broadcast %cst_141 : f32 to vector<1x18x18xf32>
    %208 = arith.minimumf %207, %206 : vector<1x18x18xf32>
    %cst_142 = arith.constant 0.166666672 : f32
    %209 = vector.broadcast %cst_142 : f32 to vector<1x18x18xf32>
    %210 = arith.mulf %208, %209 : vector<1x18x18xf32>
    %c0_143 = arith.constant 0 : index
    %c7_144 = arith.constant 7 : index
    %c0_145 = arith.constant 0 : index
    %c0_146 = arith.constant 0 : index
    %211 = vector.load %arg5[%c0_143, %c7_144, %c0_145, %c0_146] : memref<1x8x18x18xf32, #tpu.memory_space<vmem>>, vector<1x1x18x18xf32>
    %212 = vector.shape_cast %211 : vector<1x1x18x18xf32> to vector<1x18x18xf32>
    %213 = vector.shape_cast %210 : vector<1x18x18xf32> to vector<1x1x18x18xf32>
    tpu.vector_store %arg5[%c0_143, %c7_144, %c0_145, %c0_146], %213 {strides = array<i32>} : memref<1x8x18x18xf32, #tpu.memory_space<vmem>>, vector<1x1x18x18xf32>,
    return
  }
  func.func @transform_0(%arg0: i32) -> (i32, i32, i32, i32) {
    %c0_i32 = arith.constant 0 : i32
    %c0_i32_0 = arith.constant 0 : i32
    %c0_i32_1 = arith.constant 0 : i32
    %c0_i32_2 = arith.constant 0 : i32
    return %arg0, %c0_i32, %c0_i32_0, %c0_i32_1 : i32, i32, i32, i32
  }
  func.func @transform_1(%arg0: i32) -> (i32, i32, i32, i32) {
    %c0_i32 = arith.constant 0 : i32
    %c0_i32_0 = arith.constant 0 : i32
    %c0_i32_1 = arith.constant 0 : i32
    %c0_i32_2 = arith.constant 0 : i32
    return %arg0, %c0_i32, %c0_i32_0, %c0_i32_1 : i32, i32, i32, i32
  }
  func.func @transform_2(%arg0: i32) -> (i32, i32) {
    %c0_i32 = arith.constant 0 : i32
    %c0_i32_0 = arith.constant 0 : i32
    %c0_i32_1 = arith.constant 0 : i32
    return %c0_i32, %c0_i32_0 : i32, i32
  }
  func.func @transform_3(%arg0: i32) -> i32 {
    %c0_i32 = arith.constant 0 : i32
    %c0_i32_0 = arith.constant 0 : i32
    return %c0_i32 : i32
  }
  func.func @transform_4(%arg0: i32) -> (i32, i32, i32, i32) {
    %c0_i32 = arith.constant 0 : i32
    %c0_i32_0 = arith.constant 0 : i32
    %c0_i32_1 = arith.constant 0 : i32
    %c0_i32_2 = arith.constant 0 : i32
    return %arg0, %c0_i32, %c0_i32_0, %c0_i32_1 : i32, i32, i32, i32
  }
}

</mosaic_0001>

<bundles_post_ra>
// kernel: tpu_custom_call.1
= control target key start
LH: loop header
LB: loop body
LE: loop exit
PB: predicated region body
PF: predicated region fallthrough
CT: control target
= control target key end

     0   :  { %9 = vsyncpa [#allocation3], 0  ;;  %s1226_s0 = inlined_call_operand.vmem [shape: f32[2,3,18,18], index: 0, kind: input, shape index: {}]   ;;  %s1227_s1 = inlined_call_operand.vmem [shape: f32[2,8,18,18], index: 1, kind: input, shape index: {}]   ;;  %s1228_s2 = inlined_call_operand.vmem [shape: f32[8,3], index: 2, kind: input, shape index: {}]   ;;  %s1229_s3 = inlined_call_operand.vmem [shape: f32[8], index: 3, kind: input, shape index: {}]   ;;  %s1230_s4 = inlined_call_operand.vmem [shape: f32[2,8,18,18], index: 4, kind: output, shape index: {}]  }
   0x1   :  { %10 = vsyncpa [#allocation5], 0  ;;  %s909_s15 = smov 0  }
   0x2 LB: > { %s915_s16 = sadd.s32 4294967295, %s880_s15   ;;  %p715_p0 = scmp.ge.s32.totalorder %s880_s15, 1  ;;  %s880_s15 = sphi %s909_s15, %s16_s15  }
   0x3   : > { %p141_p1 = scmp.lt.s32.totalorder %s880_s15, 3  ;;  %s154_s19 = sshll.u32 %s1228_s2, 4  ;;  %s155_s19 = int_to_ptr.vmem [resolvable:$true] %s154_s19 }
   0x4   : > { %p1231_p3 = scmp.eq.s32.totalorder %s915_s16, 0  ;;  %s165_s23 = sshll.u32 %s1229_s3, 4  ;;  %s166_s23 = int_to_ptr.vmem [resolvable:$true] %s165_s23 }
   0x5   : > { %p922_p2 = pnand %p715_p0, %p141_p1  ;;  %s836_s25 = scalar_lea.vmem %s155_s19, 128 }
   0x6   : > { %p837_p6 = scmp.ne.s32.totalorder %s155_s19, %s836_s25  ;;  %p844_p10 = scmp.lt.s32.totalorder %s155_s19, %s155_s19 }
   0x7   : > { %s1233_s20 = scalar_select %p922_p2, 1, 0 }
   0x8   : > { %p815_p4 = pneg %p922_p2  ;;  %p845_p11 = scmp.lt.s32.totalorder %s836_s25, %s836_s25 }
   0xa   : > { %p934_p5 = pnand %p1231_p3, %p815_p4  ;;  %p846_p12 = por %p845_p11, %p844_p10 }
   0xc   : > { %p838_p7 = pneg %p934_p5 }
   0xe   : > { %p839_p8 = pnand %p838_p7, %p837_p6 }
  0x10   : > { %p840_p9 = pneg %p839_p8 }
  0x12   : > { %p847_p13 = pnand %p846_p12, %p840_p9 }
  0x14   : > { %850 = shalt.err (!%p847_p13)
}
  0x15   : > { %s882_s26 = smov [#allocation2]   ;;  %s851_s27 = scalar_lea.vmem %s166_s23, 16 }
  0x16   : > { %818 = dma.vmem_to_smem (!%p934_p5), %s155_s19, 128, %s882_s26, [#allocation3]  }
  0x17   : > { %p852_p0 = scmp.ne.s32.totalorder %s166_s23, %s851_s27  ;;  %p859_p3 = scmp.lt.s32.totalorder %s166_s23, %s166_s23 }
  0x18   : > { %p860_p2 = scmp.lt.s32.totalorder %s851_s27, %s851_s27 }
  0x19   : > { %p854_p1 = pnand %p852_p0, %p838_p7 }
  0x1a   : > { %p861_p6 = por %p860_p2, %p859_p3 }
  0x1b   : > { %p855_p4 = pneg %p854_p1 }
  0x1d   : > { %p862_p8 = pnand %p861_p6, %p855_p4 }
  0x1f   : > { %865 = shalt.err (!%p862_p8)
}
  0x20   : > { %s883_s28 = smov [#allocation4]   ;;  %p1235_p9 = scmp.ne.s32.totalorder %s1233_s20, 0 }
  0x21   : > { %821 = dma.vmem_to_smem (!%p934_p5), %s166_s23, 16, %s883_s28, [#allocation5]  }
  0x22   : > { %194 = sbr.rel (%p1235_p9) target bundleno = 131 (0x83), region = 36  ;;  %p1236_p10 = scmp.eq.s32.totalorder (!%p1235_p9), %s915_s16, 0 }
  0x27   : > { %871 = dma.done.wait (%p1236_p10), [#allocation3], 128   ;;  %p1237_p11 = pmov %p1236_p10 }
  0x28   : > { %p1238_p7 = pmov %p1236_p10 }
  0x29   : > { %873 = vsyncadd (%p1237_p11), [#allocation3], 4294967168 }
  0x2a   : > { %875 = dma.done.wait (%p1238_p7), [#allocation5], 16   ;;  %p1239_p2 = pmov %p1238_p7 }
  0x2c   : > { %877 = vsyncadd (%p1239_p2), [#allocation5], 4294967280 }
  0x2d   : > { %204 = sfence }
  0x2e   : > { %p230_p3 = scmp.lt.s32.totalorder %s915_s16, 1  ;;  %s259_s29 = sld [smem:[#allocation4]]  ;;  %vm297_vm0 = vcmask 146432   ;;  %vm300_vm1 = vcmask 140288  }
  0x2f   : > { %s264_s30 = sld [smem:[#allocation2]] }
  0x30   : > { %s1241_s16 = smov (!%p230_p3, %s915_s16), 1  ;;  %s731_s5 = sld [smem:[#allocation2 + $0x1]] }
  0x31   : > { %s805_s6 = smul.u32 72, %s1241_s16  ;;  %s732_s7 = sld [smem:[#allocation2 + $0x2]] }
  0x32   : > { %s806_s8 = smul.u32 192, %s1241_s16  ;;  %s960_s9 = sld [smem:[#allocation4 + $0x1]] }
  0x33   : > { %s234_s12 = scalar_lea.vmem %s1226_s0, %s805_s6  ;;  %s965_s13 = sld [smem:[#allocation2 + $0x80]] }
  0x34   : > { %v260_v0 = vstv %s259_s29  ;;  %s972_s18 = scalar_lea.vmem %s1227_s1, %s806_s8  ;;  %v974_v1 = vld [vmem:[%s234_s12] sm:$0xff]  ;;  %v976_v2 = vld [vmem:[%s234_s12 + $0x18] sm:$0xff]  ;;  %v978_v3 = vld [vmem:[%s234_s12 + $0x30] sm:$0xff]  ;;  %s986_s19 = sld [smem:[#allocation2 + $0x81]] }
  0x35   : > { %v265_v4 = vstv %s264_s30  ;;  %v256_v5 = vld [vmem:[%s972_s18] sm:$0xff]  ;;  %v982_v7 = vld [vmem:[%s234_s12 + $0x8] sm:$0xff]  ;;  %v988_v11 = vld [vmem:[%s234_s12 + $0x38] sm:$0xff]  ;;  %s994_s20 = sld [smem:[#allocation2 + $0x82]]  ;;  %s1035_s27 = scalar_lea.vmem %s1230_s4, %s806_s8 }
  0x36   : > { %v266_v6 = vmul.f32 %v265_v4, %v974_v1  ;;  %v984_v8 = vld [vmem:[%s234_s12 + $0x20] sm:$0xff]  ;;  %v261_v9 = vadd.f32 %v260_v0, %v256_v5  ;;  %v273_v10 = vstv %s731_s5  ;;  %v257_v12 = vld [vmem:[%s972_s18 + $0x8] sm:$0xff]  ;;  %v267_v13 = vmul.f32 %v265_v4, %v982_v7  ;;  %v992_v14 = vld [vmem:[%s234_s12 + $0x10] sm:$0x3]  ;;  %s1013_s21 = sld [smem:[#allocation4 + $0x2]] }
  0x37   : > { %v274_v15 = vmul.f32 %v976_v2, %v273_v10  ;;  %v281_v16 = vstv %s732_s7  ;;  %v262_v17 = vadd.f32 %v260_v0, %v257_v12  ;;  %v275_v18 = vmul.f32 %v984_v8, %v273_v10  ;;  %v998_v19 = vld [vmem:[%s234_s12 + $0x28] sm:$0x3]  ;;  %v1000_v20 = vld [vmem:[%s234_s12 + $0x40] sm:$0x3]  ;;  %v258_v21 = vld [vmem:[%s972_s18 + $0x10] sm:$0x3] }
  0x38   : > { %v269_v22 = vadd.f32 %v266_v6, %v261_v9  ;;  %v282_v23 = vmul.f32 %v978_v3, %v281_v16  ;;  %v263_v24 = vadd.f32 %v260_v0, %v258_v21  ;;  %v733_v25 = vld [vmem:[%s972_s18 + $0x18] sm:$0xff]  ;;  %v283_v27 = vmul.f32 %v988_v11, %v281_v16  ;;  %v734_v30 = vld [vmem:[%s972_s18 + $0x20] sm:$0xff]  ;;  %s1017_s22 = sld [smem:[#allocation2 + $0x100]]  ;;  %v735_v47 = vld [vmem:[%s972_s18 + $0x28] sm:$0x3] }
  0x39   : > { %v270_v26 = vadd.f32 %v267_v13, %v262_v17  ;;  %v268_v28 = vmul.f32 %v265_v4, %v992_v14  ;;  %v276_v29 = vmul.f32 %v998_v19, %v273_v10  ;;  %v284_v32 = vmul.f32 %v1000_v20, %v281_v16  ;;  %s1021_s23 = sld [smem:[#allocation2 + $0x101]]  ;;  %v743_v0 = vld [vmem:[%s972_s18 + $0x30] sm:$0xff] }
  0x3a   : > { %v277_v31 = vadd.f32 %v274_v15, %v269_v22  ;;  %v307_v33 = vstv %s960_s9  ;;  %v312_v34 = vstv %s965_s13  ;;  %v320_v40 = vstv %s986_s19  ;;  %s1026_s24 = sld [smem:[#allocation2 + $0x102]]  ;;  %v744_v22 = vld [vmem:[%s972_s18 + $0x38] sm:$0xff] }
  0x3b   : > { %v278_v35 = vadd.f32 %v275_v18, %v270_v26  ;;  %v271_v36 = vadd.f32 %v268_v28, %v263_v24  ;;  %v308_v37 = vadd.f32 %v733_v25, %v307_v33  ;;  %v313_v38 = vmul.f32 %v312_v34, %v974_v1  ;;  %s1041_s16 = sld [smem:[#allocation4 + $0x3]] }
  0x3c   : > { %v285_v39 = vadd.f32 %v282_v23, %v277_v31  ;;  %v328_v41 = vstv %s994_s20  ;;  %v309_v42 = vadd.f32 %v734_v30, %v307_v33  ;;  %v321_v46 = vmul.f32 %v976_v2, %v320_v40  ;;  %s1047_s28 = sld [smem:[#allocation2 + $0x180]]  ;;  %v745_v31 = vld [vmem:[%s972_s18 + $0x40] sm:$0x3] }
  0x3d   : > { %v286_v43 = vadd.f32 %v283_v27, %v278_v35  ;;  %v279_v44 = vadd.f32 %v276_v29, %v271_v36  ;;  %v316_v45 = vadd.f32 %v313_v38, %v308_v37  ;;  %v329_v49 = vmul.f32 %v978_v3, %v328_v41  ;;  %s1053_s29 = sld [smem:[#allocation2 + $0x181]] }
  0x3e   : > { %v288_v48 = vmax.f32 %v285_v39, 0.0  ;;  %v314_v50 = vmul.f32 %v312_v34, %v982_v7  ;;  %v322_v51 = vmul.f32 %v984_v8, %v320_v40  ;;  %v330_v55 = vmul.f32 %v988_v11, %v328_v41  ;;  %s1058_s30 = sld [smem:[#allocation2 + $0x182]] }
  0x3f   : > { %v289_v52 = vmax.f32 %v286_v43, 0.0  ;;  %v287_v53 = vadd.f32 %v284_v32, %v279_v44  ;;  %v324_v54 = vadd.f32 %v321_v46, %v316_v45  ;;  %v310_v58 = vadd.f32 %v735_v47, %v307_v33  ;;  %v753_v44 = vld [vmem:[%s972_s18 + $0x48] sm:$0xff]  ;;  %s1074_s5 = sld [smem:[#allocation4 + $0x4]] }
  0x40   : > { %v291_v56 = vmin.f32 %v288_v48, 6.0  ;;  %v317_v57 = vadd.f32 %v314_v50, %v309_v42  ;;  %v315_v59 = vmul.f32 %v312_v34, %v992_v14  ;;  %v323_v63 = vmul.f32 %v998_v19, %v320_v40  ;;  %s1079_s6 = sld [smem:[#allocation2 + $0x200]] }
  0x41   : > { %v292_v60 = vmin.f32 %v289_v52, 6.0  ;;  %v290_v61 = vmax.f32 %v287_v53, 0.0  ;;  %v332_v62 = vadd.f32 %v329_v49, %v324_v54  ;;  %v331_v9 = vmul.f32 %v1000_v20, %v328_v41  ;;  %v754_v53 = vld [vmem:[%s972_s18 + $0x50] sm:$0xff]  ;;  %s1083_s7 = sld [smem:[#allocation2 + $0x201]] }
  0x42   : > { %v294_v4 = vmul.f32 0.16666667, %v291_v56  ;;  %v325_v5 = vadd.f32 %v322_v51, %v317_v57  ;;  %v318_v6 = vadd.f32 %v315_v59, %v310_v58  ;;  %v353_v15 = vstv %s1013_s21  ;;  %s1091_s8 = sld [smem:[#allocation2 + $0x202]] }
  0x43   : > { %v295_v10 = vmul.f32 0.16666667, %v292_v60  ;;  %v293_v12 = vmin.f32 %v290_v61, 6.0  ;;  %v335_v13 = vmax.f32 %v332_v62, 0.0  ;;  %v354_v18 = vadd.f32 %v743_v0, %v353_v15  ;;  %s1104_s9 = sld [smem:[#allocation4 + $0x5]] }
  0x44   : > { %298 = vst.msk [vmem:[%s1035_s27] sm:$0xff] %vm297_vm0, %v294_v4  ;;  %v333_v16 = vadd.f32 %v330_v55, %v325_v5  ;;  %v326_v17 = vadd.f32 %v323_v63, %v318_v6  ;;  %v358_v21 = vstv %s1017_s22  ;;  %v366_v26 = vstv %s1021_s23  ;;  %v755_v5 = vld [vmem:[%s972_s18 + $0x58] sm:$0x3]  ;;  %s1108_s10 = sld [smem:[#allocation2 + $0x280]] }
  0x45   : > { %299 = vst.msk [vmem:[%s1035_s27 + $0x8] sm:$0xff] %vm297_vm0, %v295_v10  ;;  %v296_v23 = vmul.f32 0.16666667, %v293_v12  ;;  %v338_v24 = vmin.f32 %v335_v13, 6.0  ;;  %v359_v25 = vmul.f32 %v358_v21, %v974_v1  ;;  %v367_v29 = vmul.f32 %v976_v2, %v366_v26  ;;  %s1114_s11 = sld [smem:[#allocation2 + $0x281]] }
  0x46   : > { %v336_v27 = vmax.f32 %v333_v16, 0.0  ;;  %v334_v28 = vadd.f32 %v331_v9, %v326_v17  ;;  %v374_v30 = vstv %s1026_s24  ;;  %v355_v35 = vadd.f32 %v744_v22, %v353_v15  ;;  %s1121_s12 = sld [smem:[#allocation2 + $0x282]] }
  0x47   : > { %301 = vst.msk [vmem:[%s1035_s27 + $0x10] sm:$0x3] %vm300_vm1, %v296_v23  ;;  %v341_v32 = vmul.f32 0.16666667, %v338_v24  ;;  %v362_v33 = vadd.f32 %v359_v25, %v354_v18  ;;  %v375_v34 = vmul.f32 %v978_v3, %v374_v30  ;;  %v360_v38 = vmul.f32 %v358_v21, %v982_v7  ;;  %v763_v24 = vld [vmem:[%s972_s18 + $0x60] sm:$0xff]  ;;  %s1132_s13 = sld [smem:[#allocation4 + $0x6]] }
  0x48   : > { %v339_v36 = vmin.f32 %v336_v27, 6.0  ;;  %v337_v37 = vmax.f32 %v334_v28, 0.0  ;;  %v368_v39 = vmul.f32 %v984_v8, %v366_v26  ;;  %v376_v41 = vmul.f32 %v988_v11, %v374_v30  ;;  %s1135_s14 = sld [smem:[#allocation2 + $0x300]] }
  0x49   : > { %740 = vst.msk [vmem:[%s1035_s27 + $0x18] sm:$0xff] %vm297_vm0, %v341_v32  ;;  %v370_v40 = vadd.f32 %v367_v29, %v362_v33  ;;  %v356_v42 = vadd.f32 %v745_v31, %v353_v15  ;;  %v361_v43 = vmul.f32 %v358_v21, %v992_v14  ;;  %v363_v47 = vadd.f32 %v360_v38, %v355_v35  ;;  %s1139_s17 = sld [smem:[#allocation2 + $0x301]] }
  0x4a   : > { %v342_v45 = vmul.f32 0.16666667, %v339_v36  ;;  %v340_v46 = vmin.f32 %v337_v37, 6.0  ;;  %v369_v48 = vmul.f32 %v998_v19, %v366_v26  ;;  %v377_v51 = vmul.f32 %v1000_v20, %v374_v30  ;;  %v764_v37 = vld [vmem:[%s972_s18 + $0x68] sm:$0xff]  ;;  %s1145_s19 = sld [smem:[#allocation2 + $0x302]] }
  0x4b   : > { %v378_v49 = vadd.f32 %v375_v34, %v370_v40  ;;  %v364_v50 = vadd.f32 %v361_v43, %v356_v42  ;;  %v399_v52 = vstv %s1041_s16  ;;  %v371_v55 = vadd.f32 %v368_v39, %v363_v47  ;;  %s1163_s20 = sld [smem:[#allocation4 + $0x7]] }
  0x4c   : > { %741 = vst.msk [vmem:[%s1035_s27 + $0x20] sm:$0xff] %vm297_vm0, %v342_v45  ;;  %v343_v54 = vmul.f32 0.16666667, %v340_v46  ;;  %v400_v56 = vadd.f32 %v753_v44, %v399_v52  ;;  %v404_v57 = vstv %s1047_s28  ;;  %v412_v61 = vstv %s1053_s29  ;;  %s1168_s21 = sld [smem:[#allocation2 + $0x380]] }
  0x4d   : > { %v381_v58 = vmax.f32 %v378_v49, 0.0  ;;  %v372_v59 = vadd.f32 %v369_v48, %v364_v50  ;;  %v405_v60 = vmul.f32 %v404_v57, %v974_v1  ;;  %v379_v62 = vadd.f32 %v376_v41, %v371_v55  ;;  %v765_v50 = vld [vmem:[%s972_s18 + $0x70] sm:$0x3]  ;;  %s1173_s22 = sld [smem:[#allocation2 + $0x381]] }
  0x4e   : > { %742 = vst.msk [vmem:[%s1035_s27 + $0x28] sm:$0x3] %vm300_vm1, %v343_v54  ;;  %v413_v63 = vmul.f32 %v976_v2, %v412_v61  ;;  %v420_v0 = vstv %s1058_s30  ;;  %v401_v4 = vadd.f32 %v754_v53, %v399_v52  ;;  %v406_v15 = vmul.f32 %v404_v57, %v982_v7  ;;  %s1179_s23 = sld [smem:[#allocation2 + $0x382]] }
  0x4f   : > { %v384_v6 = vmin.f32 %v381_v58, 6.0  ;;  %v380_v9 = vadd.f32 %v377_v51, %v372_v59  ;;  %v408_v10 = vadd.f32 %v405_v60, %v400_v56  ;;  %v421_v12 = vmul.f32 %v978_v3, %v420_v0 }
  0x50   : > { %v382_v13 = vmax.f32 %v379_v62, 0.0  ;;  %v414_v16 = vmul.f32 %v984_v8, %v412_v61  ;;  %v422_v17 = vmul.f32 %v988_v11, %v420_v0  ;;  %v402_v23 = vadd.f32 %v755_v5, %v399_v52 }
  0x51   : > { %v387_v18 = vmul.f32 0.16666667, %v384_v6  ;;  %v383_v21 = vmax.f32 %v380_v9, 0.0  ;;  %v416_v22 = vadd.f32 %v413_v63, %v408_v10  ;;  %v409_v26 = vadd.f32 %v406_v15, %v401_v4  ;;  %v773_v63 = vld [vmem:[%s972_s18 + $0x78] sm:$0xff] }
  0x52   : > { %v385_v25 = vmin.f32 %v382_v13, 6.0  ;;  %v407_v27 = vmul.f32 %v404_v57, %v992_v14  ;;  %v415_v28 = vmul.f32 %v998_v19, %v412_v61  ;;  %v423_v31 = vmul.f32 %v1000_v20, %v420_v0 }
  0x53   : > { %750 = vst.msk [vmem:[%s1035_s27 + $0x30] sm:$0xff] %vm297_vm0, %v387_v18  ;;  %v386_v29 = vmin.f32 %v383_v21, 6.0  ;;  %v424_v30 = vadd.f32 %v421_v12, %v416_v22  ;;  %v445_v32 = vstv %s1074_s5  ;;  %v417_v34 = vadd.f32 %v414_v16, %v409_v26  ;;  %v774_v21 = vld [vmem:[%s972_s18 + $0x80] sm:$0xff] }
  0x54   : > { %v388_v33 = vmul.f32 0.16666667, %v385_v25  ;;  %v410_v35 = vadd.f32 %v407_v27, %v402_v23  ;;  %v446_v36 = vadd.f32 %v763_v24, %v445_v32  ;;  %v450_v40 = vstv %s1079_s6 }
  0x55   : > { %v389_v38 = vmul.f32 0.16666667, %v386_v29  ;;  %v427_v39 = vmax.f32 %v424_v30, 0.0  ;;  %v458_v41 = vstv %s1083_s7  ;;  %v425_v42 = vadd.f32 %v422_v17, %v417_v34  ;;  %v775_v30 = vld [vmem:[%s972_s18 + $0x88] sm:$0x3] }
  0x56   : > { %751 = vst.msk [vmem:[%s1035_s27 + $0x38] sm:$0xff] %vm297_vm0, %v388_v33  ;;  %v418_v43 = vadd.f32 %v415_v28, %v410_v35  ;;  %v451_v44 = vmul.f32 %v450_v40, %v974_v1  ;;  %v459_v45 = vmul.f32 %v976_v2, %v458_v41  ;;  %v466_v47 = vstv %s1091_s8 }
  0x57   : > { %752 = vst.msk [vmem:[%s1035_s27 + $0x40] sm:$0x3] %vm300_vm1, %v389_v38  ;;  %v430_v46 = vmin.f32 %v427_v39, 6.0  ;;  %v447_v48 = vadd.f32 %v764_v37, %v445_v32  ;;  %v452_v49 = vmul.f32 %v450_v40, %v982_v7  ;;  %v428_v51 = vmax.f32 %v425_v42, 0.0 }
  0x58   : > { %v426_v52 = vadd.f32 %v423_v31, %v418_v43  ;;  %v454_v53 = vadd.f32 %v451_v44, %v446_v36  ;;  %v467_v54 = vmul.f32 %v978_v3, %v466_v47  ;;  %v460_v57 = vmul.f32 %v984_v8, %v458_v41  ;;  %v783_v43 = vld [vmem:[%s972_s18 + $0x90] sm:$0xff] }
  0x59   : > { %v433_v55 = vmul.f32 0.16666667, %v430_v46  ;;  %v455_v56 = vadd.f32 %v452_v49, %v447_v48  ;;  %v468_v58 = vmul.f32 %v988_v11, %v466_v47  ;;  %v431_v59 = vmin.f32 %v428_v51, 6.0 }
  0x5a   : > { %v429_v60 = vmax.f32 %v426_v52, 0.0  ;;  %v462_v61 = vadd.f32 %v459_v45, %v454_v53  ;;  %v448_v62 = vadd.f32 %v765_v50, %v445_v32  ;;  %v453_v4 = vmul.f32 %v450_v40, %v992_v14 }
  0x5b   : > { %760 = vst.msk [vmem:[%s1035_s27 + $0x48] sm:$0xff] %vm297_vm0, %v433_v55  ;;  %v463_v0 = vadd.f32 %v460_v57, %v455_v56  ;;  %v461_v5 = vmul.f32 %v998_v19, %v458_v41  ;;  %v469_v6 = vmul.f32 %v1000_v20, %v466_v47  ;;  %v434_v9 = vmul.f32 0.16666667, %v431_v59  ;;  %v784_v56 = vld [vmem:[%s972_s18 + $0x98] sm:$0xff] }
  0x5c   : > { %v432_v10 = vmin.f32 %v429_v60, 6.0  ;;  %v470_v12 = vadd.f32 %v467_v54, %v462_v61  ;;  %v491_v13 = vstv %s1104_s9  ;;  %v456_v16 = vadd.f32 %v453_v4, %v448_v62  ;;  %v785_v4 = vld [vmem:[%s972_s18 + $0xa0] sm:$0x3] }
  0x5d   : > { %v471_v15 = vadd.f32 %v468_v58, %v463_v0  ;;  %v492_v17 = vadd.f32 %v773_v63, %v491_v13  ;;  %v496_v18 = vstv %s1108_s10  ;;  %761 = vst.msk [vmem:[%s1035_s27 + $0x50] sm:$0xff] %vm297_vm0, %v434_v9  ;;  %v504_v25 = vstv %s1114_s11 }
  0x5e   : > { %v435_v22 = vmul.f32 0.16666667, %v432_v10  ;;  %v473_v23 = vmax.f32 %v470_v12, 0.0  ;;  %v497_v24 = vmul.f32 %v496_v18, %v974_v1  ;;  %v464_v27 = vadd.f32 %v461_v5, %v456_v16 }
  0x5f   : > { %v474_v26 = vmax.f32 %v471_v15, 0.0  ;;  %v505_v28 = vmul.f32 %v976_v2, %v504_v25  ;;  %v512_v29 = vstv %s1121_s12  ;;  %v493_v34 = vadd.f32 %v774_v21, %v491_v13 }
  0x60   : > { %762 = vst.msk [vmem:[%s1035_s27 + $0x58] sm:$0x3] %vm300_vm1, %v435_v22  ;;  %v476_v31 = vmin.f32 %v473_v23, 6.0  ;;  %v500_v32 = vadd.f32 %v497_v24, %v492_v17  ;;  %v513_v33 = vmul.f32 %v978_v3, %v512_v29  ;;  %v472_v36 = vadd.f32 %v469_v6, %v464_v27  ;;  %v793_v27 = vld [vmem:[%s972_s18 + $0xa8] sm:$0xff] }
  0x61   : > { %v477_v35 = vmin.f32 %v474_v26, 6.0  ;;  %v498_v37 = vmul.f32 %v496_v18, %v982_v7  ;;  %v506_v38 = vmul.f32 %v984_v8, %v504_v25  ;;  %v514_v41 = vmul.f32 %v988_v11, %v512_v29 }
  0x62   : > { %v479_v39 = vmul.f32 0.16666667, %v476_v31  ;;  %v508_v40 = vadd.f32 %v505_v28, %v500_v32  ;;  %v494_v42 = vadd.f32 %v775_v30, %v491_v13  ;;  %v475_v45 = vmax.f32 %v472_v36, 0.0  ;;  %v794_v36 = vld [vmem:[%s972_s18 + $0xb0] sm:$0xff] }
  0x63   : > { %v480_v44 = vmul.f32 0.16666667, %v477_v35  ;;  %v501_v46 = vadd.f32 %v498_v37, %v493_v34  ;;  %v499_v47 = vmul.f32 %v496_v18, %v992_v14  ;;  %v507_v49 = vmul.f32 %v998_v19, %v504_v25 }
  0x64   : > { %770 = vst.msk [vmem:[%s1035_s27 + $0x60] sm:$0xff] %vm297_vm0, %v479_v39  ;;  %v516_v48 = vadd.f32 %v513_v33, %v508_v40  ;;  %v515_v50 = vmul.f32 %v1000_v20, %v512_v29  ;;  %v537_v51 = vstv %s1132_s13  ;;  %v478_v52 = vmin.f32 %v475_v45, 6.0 }
  0x65   : > { %771 = vst.msk [vmem:[%s1035_s27 + $0x68] sm:$0xff] %vm297_vm0, %v480_v44  ;;  %v509_v53 = vadd.f32 %v506_v38, %v501_v46  ;;  %v502_v54 = vadd.f32 %v499_v47, %v494_v42  ;;  %v538_v55 = vadd.f32 %v783_v43, %v537_v51  ;;  %v542_v58 = vstv %s1135_s14 }
  0x66   : > { %v519_v57 = vmax.f32 %v516_v48, 0.0  ;;  %v550_v59 = vstv %s1139_s17  ;;  %v558_v60 = vstv %s1145_s19  ;;  %v481_v61 = vmul.f32 0.16666667, %v478_v52 }
  0x67   : > { %v517_v62 = vadd.f32 %v514_v41, %v509_v53  ;;  %v510_v63 = vadd.f32 %v507_v49, %v502_v54  ;;  %v543_v0 = vmul.f32 %v542_v58, %v974_v1  ;;  %v551_v6 = vmul.f32 %v976_v2, %v550_v59  ;;  %v795_v49 = vld [vmem:[%s972_s18 + $0xb8] sm:$0x3] }
  0x68   : > { %v522_v5 = vmin.f32 %v519_v57, 6.0  ;;  %v559_v9 = vmul.f32 %v978_v3, %v558_v60  ;;  %v539_v10 = vadd.f32 %v784_v56, %v537_v51  ;;  %772 = vst.msk [vmem:[%s1035_s27 + $0x70] sm:$0x3] %vm300_vm1, %v481_v61  ;;  %v544_v16 = vmul.f32 %v542_v58, %v982_v7 }
  0x69   : > { %v520_v12 = vmax.f32 %v517_v62, 0.0  ;;  %v518_v13 = vadd.f32 %v515_v50, %v510_v63  ;;  %v546_v15 = vadd.f32 %v543_v0, %v538_v55  ;;  %v552_v18 = vmul.f32 %v984_v8, %v550_v59 }
  0x6a   : > { %v525_v17 = vmul.f32 0.16666667, %v522_v5  ;;  %v560_v21 = vmul.f32 %v988_v11, %v558_v60  ;;  %v540_v22 = vadd.f32 %v785_v4, %v537_v51  ;;  %v547_v26 = vadd.f32 %v544_v16, %v539_v10 }
  0x6b   : > { %v523_v23 = vmin.f32 %v520_v12, 6.0  ;;  %v521_v24 = vmax.f32 %v518_v13, 0.0  ;;  %v554_v25 = vadd.f32 %v551_v6, %v546_v15  ;;  %v545_v28 = vmul.f32 %v542_v58, %v992_v14 }
  0x6c   : > { %780 = vst.msk [vmem:[%s1035_s27 + $0x78] sm:$0xff] %vm297_vm0, %v525_v17  ;;  %v553_v29 = vmul.f32 %v998_v19, %v550_v59  ;;  %v561_v30 = vmul.f32 %v1000_v20, %v558_v60  ;;  %v583_v31 = vstv %s1163_s20  ;;  %v555_v35 = vadd.f32 %v552_v18, %v547_v26 }
  0x6d   : > { %v526_v32 = vmul.f32 0.16666667, %v523_v23  ;;  %v524_v33 = vmin.f32 %v521_v24, 6.0  ;;  %v562_v34 = vadd.f32 %v559_v9, %v554_v25  ;;  %v548_v37 = vadd.f32 %v545_v28, %v540_v22 }
  0x6e   : > { %v584_v38 = vadd.f32 %v793_v27, %v583_v31  ;;  %v588_v39 = vstv %s1168_s21  ;;  %v596_v40 = vstv %s1173_s22  ;;  %v563_v43 = vadd.f32 %v560_v21, %v555_v35 }
  0x6f   : > { %781 = vst.msk [vmem:[%s1035_s27 + $0x80] sm:$0xff] %vm297_vm0, %v526_v32  ;;  %v527_v41 = vmul.f32 0.16666667, %v524_v33  ;;  %v565_v42 = vmax.f32 %v562_v34, 0.0  ;;  %v589_v44 = vmul.f32 %v588_v39, %v974_v1  ;;  %v556_v45 = vadd.f32 %v553_v29, %v548_v37 }
  0x70   : > { %v597_v46 = vmul.f32 %v976_v2, %v596_v40  ;;  %v604_v47 = vstv %s1179_s23  ;;  %v585_v48 = vadd.f32 %v794_v36, %v583_v31  ;;  %v566_v51 = vmax.f32 %v563_v43, 0.0 }
  0x71   : > { %782 = vst.msk [vmem:[%s1035_s27 + $0x88] sm:$0x3] %vm300_vm1, %v527_v41  ;;  %v568_v50 = vmin.f32 %v565_v42, 6.0  ;;  %v592_v52 = vadd.f32 %v589_v44, %v584_v38  ;;  %v605_v53 = vmul.f32 %v978_v3, %v604_v47  ;;  %v564_v54 = vadd.f32 %v561_v30, %v556_v45 }
  0x72   : > { %v590_v55 = vmul.f32 %v588_v39, %v982_v7  ;;  %v598_v56 = vmul.f32 %v984_v8, %v596_v40  ;;  %v606_v1 = vmul.f32 %v988_v11, %v604_v47  ;;  %v569_v57 = vmin.f32 %v566_v51, 6.0 }
  0x73   : > { %v571_v2 = vmul.f32 0.16666667, %v568_v50  ;;  %v600_v58 = vadd.f32 %v597_v46, %v592_v52  ;;  %v586_v59 = vadd.f32 %v795_v49, %v583_v31  ;;  %v567_v60 = vmax.f32 %v564_v54, 0.0 }
  0x74   : > { %v593_v61 = vadd.f32 %v590_v55, %v585_v48  ;;  %v591_v62 = vmul.f32 %v588_v39, %v992_v14  ;;  %v599_v63 = vmul.f32 %v998_v19, %v596_v40  ;;  %v572_v3 = vmul.f32 0.16666667, %v569_v57 }
  0x75   : > { %790 = vst.msk [vmem:[%s1035_s27 + $0x90] sm:$0xff] %vm297_vm0, %v571_v2  ;;  %v608_v7 = vadd.f32 %v605_v53, %v600_v58  ;;  %v570_v0 = vmin.f32 %v567_v60, 6.0  ;;  %v607_v4 = vmul.f32 %v1000_v20, %v604_v47 }
  0x76   : > { %v601_v8 = vadd.f32 %v598_v56, %v593_v61  ;;  %v594_v11 = vadd.f32 %v591_v62, %v586_v59  ;;  %791 = vst.msk [vmem:[%s1035_s27 + $0x98] sm:$0xff] %vm297_vm0, %v572_v3 }
  0x77   : > { %v611_v5 = vmax.f32 %v608_v7, 0.0  ;;  %v573_v6 = vmul.f32 0.16666667, %v570_v0 }
  0x78   : > { %v609_v9 = vadd.f32 %v606_v1, %v601_v8  ;;  %v602_v14 = vadd.f32 %v599_v63, %v594_v11 }
  0x79   : > { %v614_v10 = vmin.f32 %v611_v5, 6.0  ;;  %792 = vst.msk [vmem:[%s1035_s27 + $0xa0] sm:$0x3] %vm300_vm1, %v573_v6 }
  0x7a   : > { %v612_v19 = vmax.f32 %v609_v9, 0.0  ;;  %v610_v12 = vadd.f32 %v607_v4, %v602_v14 }
  0x7b   : > { %v617_v13 = vmul.f32 0.16666667, %v614_v10 }
  0x7c   : > { %v615_v15 = vmin.f32 %v612_v19, 6.0  ;;  %v613_v16 = vmax.f32 %v610_v12, 0.0 }
  0x7d   : > { %800 = vst.msk [vmem:[%s1035_s27 + $0xa8] sm:$0xff] %vm297_vm0, %v617_v13 }
  0x7e   : > { %v618_v17 = vmul.f32 0.16666667, %v615_v15  ;;  %v616_v20 = vmin.f32 %v613_v16, 6.0 }
  0x80   : > { %801 = vst.msk [vmem:[%s1035_s27 + $0xb0] sm:$0xff] %vm297_vm0, %v618_v17  ;;  %v619_v18 = vmul.f32 0.16666667, %v616_v20 }
  0x82   : > { %802 = vst.msk [vmem:[%s1035_s27 + $0xb8] sm:$0x3] %vm300_vm1, %v619_v18 }
  0x83 PF: > { %s16_s15 = sadd.s32 1, %s880_s15  }
  0x84   : > { %p13_p5 = scmp.ge.s32.totalorder %s16_s15, 4  }
  0x86   :  { %15 = sbr.rel (!%p13_p5) target bundleno = 2 (0x2), region = 94 }
  0x8b   :  { %645 = vsyncpa [#allocation3], 1 }
  0x8c   :  { %647 = vsyncpa [#allocation3 + $0x1], 1 }
  0x8d   :  { %648 = vsyncpa [#allocation5], 1 }

</bundles_post_ra>
